<compile_context>
chip_gen: v7x
topology: tpu7x:2x2x1
jax: 0.10.0
libtpu: 0.0.40
codegen_flags: <defaults>
</compile_context>

<pallas_src>
import functools

import jax
import jax.numpy as jnp
from jax import lax
from jax.experimental import pallas as pl
from jax.experimental.pallas import tpu as pltpu


def _round_up(x, m):
    return -(-x // m) * m


def _focal_loss_kernel(logits_ref, aux_ref, out_ref, *, gamma, n_valid, tile_n):
    # logits_ref: (tile_n, C) native dtype; aux_ref: (tile_n, 2) f32
    # aux[:, 0] = logit of the target class, aux[:, 1] = alpha[target]
    x = logits_ref[...].astype(jnp.float32)                     # cast in-kernel
    aux = aux_ref[...]
    x_t = aux[:, 0:1]                                            # (tile_n, 1)
    alpha_t = aux[:, 1:2]                                        # (tile_n, 1)

    # Numerically stable log-softmax evaluated only at the target class.
    m = jnp.max(x, axis=-1, keepdims=True)                       # (tile_n, 1)
    lse = jnp.log(jnp.sum(jnp.exp(x - m), axis=-1, keepdims=True))
    log_p = (x_t - m) - lse                                      # log softmax[target]
    p_t = jnp.exp(log_p)                                         # softmax[target]

    one_minus = 1.0 - p_t
    g = float(gamma)
    if g == int(g) and g >= 0.0:
        # Integer gamma (default 2): pure VPU multiplies, no exp/log round trip.
        focal = lax.integer_pow(one_minus, int(g))
    else:
        focal = jnp.power(one_minus, g)

    per_row = -alpha_t * focal * log_p                           # (tile_n, 1)

    def _write(rows):
        # Broadcast the tile partial sum into a full (8,128) block: one unmasked
        # lane-dense vst; each grid step owns its own output block (parallel-safe).
        out_ref[...] = jnp.sum(rows) * jnp.ones((8, 128), jnp.float32)

    n_tail = n_valid % tile_n
    if n_tail == 0:
        # N divides the tile: no masking anywhere.
        _write(per_row)
    else:
        # Only the last tile carries OOB/garbage rows (no jnp.pad in the wrapper);
        # gate the mask so interior tiles skip it.
        i = pl.program_id(0)
        last = pl.num_programs(0) - 1

        @pl.when(i != last)
        def _():
            _write(per_row)

        @pl.when(i == last)
        def _():
            row = lax.broadcasted_iota(jnp.int32, per_row.shape, 0)
            _write(jnp.where(row < n_tail, per_row, 0.0))


def _vmem_limit_bytes():
    """Scoped VMEM limit: ~48 MiB on v7x (64 MiB physical), ~96 MiB on v5e/v6e."""
    try:
        cap = int(pltpu.get_tpu_info().vmem_capacity_bytes)
    except Exception:
        cap = 64 * 1024 * 1024  # v7x-safe fallback
    return int(min(max(cap - 16 * 1024 * 1024, 32 * 1024 * 1024), 96 * 1024 * 1024))


def _pick_tile_n(N, C, itemsize, budget_bytes):
    """Largest row tile whose *real* VMEM working set fits the budget.

    Accounts for:
      * lane padding of the logits block to round_up(C, 128) lanes,
      * double-buffered logits DMA buffers (x2),
      * ~4 tile-sized f32 temporaries the kernel body materializes,
      * the double-buffered (tile_n, 2) f32 aux block (lane-padded to 128).
    """
    c_pad = _round_up(max(C, 1), 128)
    row_align = 8 * max(1, 4 // max(1, itemsize))       # f32: 8, bf16: 16, int8: 32
    per_row = (2 * c_pad * itemsize        # 2x buffered logits block
               + 4 * c_pad * 4             # in-kernel f32 temporaries (x, x-m, exp, slack)
               + 2 * 128 * 4)              # 2x buffered aux block, lane-padded
    rows = budget_bytes // per_row
    rows = max(row_align, (rows // row_align) * row_align)
    rows = min(rows, _round_up(N, row_align))
    return int(rows), row_align


def focal_loss(inputs, targets, alpha=None, *, gamma=2.0, size_average=True,
               tile_n=None, interpret=False):
    """Pallas TPU implementation of FocalLoss.forward.

    inputs : (N, C) float logits (any float dtype; cast to f32 in-kernel)
    targets: (N,)   integer class ids
    alpha  : (C,) or (C, 1) per-class weights (default: ones, like the module)
    returns: scalar float32 loss (mean if size_average else sum)
    """
    inputs = jnp.asarray(inputs)
    N, C = inputs.shape
    if alpha is None:
        alpha = jnp.ones((C,), jnp.float32)
    alpha_flat = jnp.asarray(alpha, jnp.float32).reshape(-1)
    tgt = jnp.asarray(targets, jnp.int32).reshape(-1)

    # Hoisted O(N) gathers (negligible vs streaming N*C logits): target logit
    # (gathered from the native-dtype logits, then cast) and alpha[target].
    x_tgt = jnp.take_along_axis(inputs, tgt[:, None], axis=-1).astype(jnp.float32)
    alpha_t = alpha_flat[tgt][:, None]
    aux = jnp.concatenate([x_tgt, alpha_t], axis=1)              # (N, 2) float32

    itemsize = jnp.dtype(inputs.dtype).itemsize
    vmem_limit = _vmem_limit_bytes()
    auto_tile, row_align = _pick_tile_n(N, C, itemsize,
                                        budget_bytes=(vmem_limit * 3) // 4)
    if tile_n is None:
        tile_n = auto_tile
    tile_n = max(row_align, (int(tile_n) // row_align) * row_align)

    # Ragged N handled in-kernel via the last-tile mask: no jnp.pad of the logits.
    num_tiles = -(-N // tile_n)

    kernel = functools.partial(_focal_loss_kernel, gamma=float(gamma),
                               n_valid=N, tile_n=tile_n)

    cost = pl.CostEstimate(
        flops=int(6 * N * C + 10 * N),
        transcendentals=int(N * C + 2 * N),
        bytes_accessed=int(N * C * itemsize + N * 2 * 4 + num_tiles * 8 * 128 * 4),
    )

    partials = pl.pallas_call(
        kernel,
        out_shape=jax.ShapeDtypeStruct((num_tiles * 8, 128), jnp.float32),
        grid=(num_tiles,),
        in_specs=[
            pl.BlockSpec((tile_n, C), lambda i: (i, 0)),   # logits, native dtype
            pl.BlockSpec((tile_n, 2), lambda i: (i, 0)),   # (target logit, alpha_t) f32
        ],
        out_specs=pl.BlockSpec((8, 128), lambda i: (i, 0)),
        compiler_params=pltpu.CompilerParams(
            dimension_semantics=("parallel",),
            vmem_limit_bytes=vmem_limit,
        ),
        cost_estimate=cost,
        interpret=interpret,
    )(inputs, aux)

    # Tiny final reduction over per-tile partial sums (row 0, lane 0 of each block).
    total = jnp.sum(partials[::8, 0])
    if size_average:
        return total / jnp.float32(N)
    return total


def _focal_loss_ref(logits, targets, alpha, gamma, size_average):
    """Pure-JAX reference (same math as the PyTorch module)."""
    x = logits.astype(jnp.float32)
    logp = jax.nn.log_softmax(x, axis=-1)
    lp_t = jnp.take_along_axis(logp, targets[:, None].astype(jnp.int32), axis=-1)[:, 0]
    p_t = jnp.exp(lp_t)
    a_t = jnp.asarray(alpha, jnp.float32).reshape(-1)[targets]
    loss = -a_t * (1.0 - p_t) ** gamma * lp_t
    return jnp.mean(loss) if size_average else jnp.sum(loss)


if __name__ == "__main__":
    key = jax.random.PRNGKey(0)

    # --- Test 1: module defaults (class_num=2, alpha=ones, gamma=2, mean) ----
    N1, C1 = 8, 2
    k1, k2, k3, k4 = jax.random.split(key, 4)
    logits1 = jax.random.normal(k1, (N1, C1), dtype=jnp.float32)
    targets1 = jax.random.randint(k2, (N1,), 0, C1, dtype=jnp.int32)
    alpha1 = jnp.ones((C1, 1), dtype=jnp.float32)   # module default init

    loss1 = focal_loss(logits1, targets1, alpha1, gamma=2.0, size_average=True)
    jax.block_until_ready(loss1)
    ref1 = _focal_loss_ref(logits1, targets1, alpha1, 2.0, True)
    assert jnp.allclose(loss1, ref1, rtol=1e-5, atol=1e-6), (loss1, ref1)

    # --- Test 2: bf16 logits, ragged N, multiple grid tiles, sum reduction ---
    N2, C2 = 100, 4
    logits2 = jax.random.normal(k3, (N2, C2), dtype=jnp.float32).astype(jnp.bfloat16)
    targets2 = jax.random.randint(k4, (N2,), 0, C2, dtype=jnp.int32)
    alpha2 = jnp.arange(1, C2 + 1, dtype=jnp.float32) / C2

    loss2 = focal_loss(logits2, targets2, alpha2, gamma=2.0, size_average=False,
                       tile_n=32)   # forces 4 tiles + ragged (masked) last tile
    jax.block_until_ready(loss2)
    ref2 = _focal_loss_ref(logits2, targets2, alpha2, 2.0, False)
    assert jnp.allclose(loss2, ref2, rtol=1e-4, atol=1e-5), (loss2, ref2)

    print("KERNEL_OK")
</pallas_src>

<mosaic_0001>
module attributes {stable_mosaic.version = 11 : i64} {
  func.func @_focal_loss_kernel(%arg0: i32, %arg1: memref<8x2xf32, #tpu.memory_space<vmem>>, %arg2: memref<8x2xf32, #tpu.memory_space<vmem>>, %arg3: memref<8x128xf32, #tpu.memory_space<vmem>>) attributes {dimension_semantics = [#tpu.dimension_semantics<parallel>], iteration_bounds = array<i64: 1>, scalar_prefetch = 0 : i64, scratch_operands = 0 : i64, tpu.core_type = #tpu.core_type<tc>, window_params = [{transform_indices = @transform_0, window_bounds = array<i64: 8, 2>}, {transform_indices = @transform_1, window_bounds = array<i64: 8, 2>}, {transform_indices = @transform_2, window_bounds = array<i64: 8, 128>}]} {
    %c0 = arith.constant 0 : index
    %c0_0 = arith.constant 0 : index
    %0 = vector.load %arg1[%c0, %c0_0] : memref<8x2xf32, #tpu.memory_space<vmem>>, vector<8x2xf32>
    %c0_1 = arith.constant 0 : index
    %c0_2 = arith.constant 0 : index
    %1 = vector.load %arg2[%c0_1, %c0_2] : memref<8x2xf32, #tpu.memory_space<vmem>>, vector<8x2xf32>
    %2 = vector.extract_strided_slice %1 {offsets = [0, 0], sizes = [8, 1], strides = [1, 1]} : vector<8x2xf32> to vector<8x1xf32>
    %3 = vector.extract_strided_slice %1 {offsets = [0, 1], sizes = [8, 1], strides = [1, 1]} : vector<8x2xf32> to vector<8x1xf32>
    %cst = arith.constant dense<0xFF800000> : vector<8xf32>
    %4 = vector.multi_reduction <maximumf>, %0, %cst [1] : vector<8x2xf32> to vector<8xf32>
    %5 = vector.shape_cast %4 : vector<8xf32> to vector<8x1xf32>
    %6 = vector.broadcast %5 : vector<8x1xf32> to vector<8x2xf32>
    %7 = arith.subf %0, %6 : vector<8x2xf32>
    %8 = math.exp %7 : vector<8x2xf32>
    %cst_3 = arith.constant dense<0.000000e+00> : vector<8xf32>
    %9 = vector.multi_reduction <add>, %8, %cst_3 [1] : vector<8x2xf32> to vector<8xf32>
    %10 = vector.shape_cast %9 : vector<8xf32> to vector<8x1xf32>
    %11 = math.log %10 : vector<8x1xf32>
    %12 = arith.subf %2, %5 : vector<8x1xf32>
    %13 = arith.subf %12, %11 : vector<8x1xf32>
    %14 = math.exp %13 : vector<8x1xf32>
    %cst_4 = arith.constant 1.000000e+00 : f32
    %15 = vector.broadcast %cst_4 : f32 to vector<8x1xf32>
    %16 = arith.subf %15, %14 : vector<8x1xf32>
    %17 = arith.mulf %16, %16 : vector<8x1xf32>
    %cst_5 = arith.constant 0.000000e+00 : f32
    %18 = vector.broadcast %cst_5 : f32 to vector<8x1xf32>
    %19 = arith.subf %18, %3 : vector<8x1xf32>
    %20 = arith.mulf %19, %17 : vector<8x1xf32>
    %21 = arith.mulf %20, %13 : vector<8x1xf32>
    %22 = vector.shape_cast %21 : vector<8x1xf32> to vector<1x8x1xf32>
    %cst_6 = arith.constant dense<0.000000e+00> : vector<1xf32>
    %23 = vector.multi_reduction <add>, %22, %cst_6 [1, 2] : vector<1x8x1xf32> to vector<1xf32>
    %24 = vector.shape_cast %23 : vector<1xf32> to vector<1x1x1xf32>
    %25 = vector.extract %24[0, 0, 0] : f32 from vector<1x1x1xf32>
    %cst_7 = arith.constant 1.000000e+00 : f32
    %26 = vector.broadcast %cst_7 : f32 to vector<8x128xf32>
    %27 = vector.broadcast %25 : f32 to vector<8x128xf32>
    %28 = arith.mulf %27, %26 : vector<8x128xf32>
    %c0_8 = arith.constant 0 : index
    %c0_9 = arith.constant 0 : index
    %29 = vector.load %arg3[%c0_8, %c0_9] : memref<8x128xf32, #tpu.memory_space<vmem>>, vector<8x128xf32>
    tpu.vector_store %arg3[%c0_8, %c0_9], %28 {strides = array<i32>} : memref<8x128xf32, #tpu.memory_space<vmem>>, vector<8x128xf32>,
    return
  }
  func.func @transform_0(%arg0: i32) -> (i32, i32) {
    %c0_i32 = arith.constant 0 : i32
    %c0_i32_0 = arith.constant 0 : i32
    return %arg0, %c0_i32 : i32, i32
  }
  func.func @transform_1(%arg0: i32) -> (i32, i32) {
    %c0_i32 = arith.constant 0 : i32
    %c0_i32_0 = arith.constant 0 : i32
    return %arg0, %c0_i32 : i32, i32
  }
  func.func @transform_2(%arg0: i32) -> (i32, i32) {
    %c0_i32 = arith.constant 0 : i32
    %c0_i32_0 = arith.constant 0 : i32
    return %arg0, %c0_i32 : i32, i32
  }
}

</mosaic_0001>

<bundles_post_ra>
// kernel: tpu_custom_call.1
= control target key start
LH: loop header
LB: loop body
LE: loop exit
PB: predicated region body
PF: predicated region fallthrough
CT: control target
= control target key end

     0   :  { %vm14_vm0 = vcmask 15360   ;;  %s145_s0 = inlined_call_operand.vmem [shape: f32[8,2], index: 0, kind: input, shape index: {}]   ;;  %s146_s1 = inlined_call_operand.vmem [shape: f32[8,2], index: 1, kind: input, shape index: {}]   ;;  %s147_s2 = inlined_call_operand.hbm [shape: f32[8,128], index: 2, kind: output, shape index: {}]  }
   0x1   :  { %v12_v0 = vld [vmem:[%s145_s0] sm:$0xff] }
   0x2   :  { %7 = vsyncpa [#allocation3], 0  ;;  %v15_v1 = vsel %vm14_vm0, %v12_v0, -inf  ;;  %v13_v8 = vld [vmem:[%s146_s1] sm:$0xff]  ;;  %s109_s0 = smov 1   ;;  %s110_s13 = smov 127  }
   0x3   :  { %16 = vmax.xlane.f32.xlu0 %v15_v1  ;;  %v32_v17 = vsub.f32 0.0, %v13_v8  ;;  %vm47_vm1 = vcmask 7168   ;;  %s111_s1 = smov [#allocation2]  }
   0x4   :  { %s66_s14 = sshll.u32 %s111_s1, 4  ;;  %s67_s14 = int_to_ptr.vmem [resolvable:$true] %s66_s14 }
   0x5   :  { %s85_s16 = scalar_lea.vmem %s67_s14, 128  ;;  %p90_p1 = scmp.lt.s32.totalorder %s67_s14, %s67_s14 }
   0x6   :  { %p86_p0 = scmp.ne.s32.totalorder %s67_s14, %s85_s16  ;;  %p91_p2 = scmp.lt.s32.totalorder %s85_s16, %s85_s16 }
   0x8   :  { %p92_p3 = por %p91_p2, %p90_p1 }
   0xa   :  { %p93_p4 = pnand %p92_p3, %p86_p0 }
  0x90   :  { %v17_v2 = vpop.xlane.xlu0 %16 }
  0x91   :  { %v18_v3 = vsub.f32 %v12_v0, %v17_v2  ;;  %v26_v10 = vsub.f32 %v13_v8, %v17_v2 }
  0x93   :  { %v19_v4 = vmul.f32 1.442695, %v18_v3 }
  0x95   :  { %79 = vpow2.f32 %v19_v4 }
  0x9f   :  { %v80_v5 = vpop.eup %79 }
  0xa0   :  { %v21_v6 = vsel %vm14_vm0, %v80_v5, 0.0 }
  0xa1   :  { %22 = vadd.xlane.f32.xlu0 %v21_v6 }
 0x12e   :  { %v23_v7 = vpop.xlane.xlu0 %22 }
 0x12f   :  { %81 = vlog2.f32 %v23_v7 }
 0x139   :  { %v82_v9 = vpop.eup %81 }
 0x13a   :  { %v25_v11 = vmul.f32 0.6931472, %v82_v9 }
 0x13c   :  { %v27_v12 = vsub.f32 %v26_v10, %v25_v11 }
 0x13e   :  { %v28_v13 = vmul.f32 1.442695, %v27_v12 }
 0x140   :  { %83 = vpow2.f32 %v28_v13 }
 0x14a   :  { %v84_v14 = vpop.eup %83 }
 0x14b   :  { %v30_v15 = vsub.f32 1.0, %v84_v14 }
 0x14d   :  { %v31_v16 = vmul.f32 %v30_v15, %v30_v15 }
 0x14f   :  { %34 = vrot.lane.b32.xlu1 %v31_v16, %s109_s0 }
 0x153   :  { %39 = vrot.lane.b32.xlu1 %v27_v12, %s109_s0 }
 0x1c1   :  { %v35_v18 = vpop.permute.xlu1 %34 }
 0x1c2   :  { %v37_v19 = vmul.f32 %v35_v18, %v32_v17 }
 0x1c5   :  { %v40_v20 = vpop.permute.xlu1 %39 }
 0x1c6   :  { %v42_v21 = vmul.f32 %v40_v20, %v37_v19 }
 0x1c8   :  { %44 = vrot.lane.b32.xlu0 %v42_v21, %s110_s13 }
 0x23a   :  { %v45_v22 = vpop.permute.xlu0 %44 }
 0x23b   :  { %v48_v23 = vsel %vm47_vm1, %v45_v22, 0.0 }
 0x23c   :  { %49 = vadd.xlane.f32.xlu1 %v48_v23 }
 0x2c9   :  { %v50_v24 = vpop.xlane.xlu1 %49 }
 0x2ca   :  { %v51_v25 = vrot.slane %v50_v24, 4 }
 0x2cc   :  { %v52_v26 = vadd.f32 %v51_v25, %v50_v24 }
 0x2ce   :  { %v53_v27 = vrot.slane %v52_v26, 2 }
 0x2d0   :  { %v54_v28 = vadd.f32 %v53_v27, %v52_v26 }
 0x2d2   :  { %v55_v29 = vrot.slane %v54_v28, 1 }
 0x2d4   :  { %v56_v30 = vadd.f32 %v55_v29, %v54_v28 }
 0x2d6   :  { %74 = vpush %v56_v30 }
 0x307   :  { %s75_s15 = spop %74 }
 0x308   :  { %v58_v31 = vstv %s75_s15 }
 0x309   :  { %59 = vst [vmem:[#allocation2] sm:$0xff] %v58_v31 }
 0x30a   :  { %96 = shalt.err (!%p93_p4)
}
 0x30b   :  { %s97_s19 = scalar_lea.hbm %s147_s2, 128 }
 0x30c   :  { %p98_p5 = scmp.ne.s32.totalorder %s147_s2, %s97_s19  ;;  %p101_p6 = scmp.lt.u32.totalorder %s97_s19, %s147_s2 }
 0x30e   :  { %p103_p7 = pnand %p101_p6, %p98_p5 }
 0x310   :  { %106 = shalt.err (!%p103_p7)
}
 0x311   :  { %69 = dma.vmem_to_hbm [thread:$0]  %s67_s14, 128, %s147_s2, [#allocation3]  }
 0x312   :  { %107 = dma.done.wait [#allocation3], 128  }
 0x313   :  { %108 = vsyncadd [#allocation3], 4294967168 }
 0x314   :  { %73 = vsyncpa [#allocation3], 1 }

</bundles_post_ra>
